<compile_context>
chip_gen: v5e
topology: v5e:2x2
jax: 0.10.0
libtpu: 0.0.40
codegen_flags: <defaults>
</compile_context>

<pallas_src>
import jax
import jax.numpy as jnp
from jax import lax
from jax.experimental import pallas as pl
from jax.experimental.pallas import tpu as pltpu


def gcn_spa_kernel(x_ref, gT_ref, w_ref, w1_ref, o_ref):
    # x_ref  : (B, C_in, V*T)   NCHW-flat activations, lane-dense minor dim
    # gT_ref : (B, V*T, V*T)    permuted block-diagonal adjacency (pre-transposed)
    # w_ref  : (C_out, C_in)    weights of self.w  (1x1 conv, bias=False)
    # w1_ref : (C_out, C_in)    weights of self.w1 (1x1 conv, bias=False)
    # o_ref  : (B, C_out, V*T)  lane-dense output slab in NCHW-flat order
    B = x_ref.shape[0]

    w = w_ref[...].astype(jnp.float32)       # (C_out, C_in)
    w1 = w1_ref[...].astype(jnp.float32)     # (C_out, C_in)

    for b in range(B):                       # B is 1 or 2 (static unroll)
        x = x_ref[b].astype(jnp.float32)     # (C_in, V*T)
        gT = gT_ref[b].astype(jnp.float32)   # (V*T, V*T)

        # Single MXU pass does the whole per-frame graph aggregation for this sample:
        # gx[c, u*T+t] = sum_v g[t,u,v] * x[c, v*T+t]
        gx = jnp.dot(x, gT, preferred_element_type=jnp.float32)     # (C_in, V*T)

        # Two 1x1 projections + add (no concat/reshape relayouts).
        y = jnp.dot(w, gx, preferred_element_type=jnp.float32)      # (C_out, V*T)
        y = y + jnp.dot(w1, x, preferred_element_type=jnp.float32)  # (C_out, V*T)

        o_ref[b] = y.astype(o_ref.dtype)     # unmasked 128-lane store


def _tensorcores_per_chip():
    """Best-effort detection: v7x exposes 2 TensorCores per chip, v5e/v6e have 1."""
    try:
        kind = jax.devices()[0].device_kind.lower()
    except Exception:
        return 1
    return 2 if "v7" in kind else 1


def gcn_spa_forward(x1, g, w, w1):
    """x1: (N, C_in, V, T), g: (N, T, V, V), w/w1: (C_out, C_in). Returns (N, C_out, V, T)."""
    N, C_in, V, T = x1.shape
    C_out = w.shape[0]
    VT = V * T

    # NCHW-flat (v, t) minor order: free reshape, no transpose.
    x_flat = x1.reshape(N, C_in, VT)

    # Permuted block-diagonal adjacency, pre-transposed for right-multiplication:
    #   G_T[n, v*T+s, u*T+t] = g[n, t, u, v] * (s == t)
    # so that (x_flat @ G_T)[n, c, u*T+t] == (g.matmul(x))[n, t, u, c] in NCHW-flat order.
    eye_T = jnp.eye(T, dtype=g.dtype)
    g_T = jnp.einsum('ntuv,st->nvsut', g, eye_T).reshape(N, VT, VT)

    # One grid step per TensorCore: shard samples across the 2 TCs on v7x, collapse the
    # batch into a single step on single-TC v5e/v6e (per-step overhead dominates there).
    cores = _tensorcores_per_chip()
    steps = N if (cores >= 2 and N > 1 and N % cores == 0) else 1
    B = N // steps

    out_flat = pl.pallas_call(
        gcn_spa_kernel,
        out_shape=jax.ShapeDtypeStruct((N, C_out, VT), x1.dtype),
        grid_spec=pl.GridSpec(
            grid=(steps,),
            in_specs=[
                pl.BlockSpec((B, C_in, VT), lambda n: (n, 0, 0)),
                pl.BlockSpec((B, VT, VT), lambda n: (n, 0, 0)),
                pl.BlockSpec((C_out, C_in), lambda n: (0, 0)),  # revisited, not re-DMA'd
                pl.BlockSpec((C_out, C_in), lambda n: (0, 0)),
            ],
            out_specs=pl.BlockSpec((B, C_out, VT), lambda n: (n, 0, 0)),
        ),
        compiler_params=pltpu.CompilerParams(
            dimension_semantics=("parallel",)),
    )(x_flat, g_T, w, w1)

    # NCHW-flat order means this is a free reshape (no transpose).
    return out_flat.reshape(N, C_out, V, T)


def gcn_spa_reference(x1, g, w, w1):
    """Pure-JAX reference mirroring the PyTorch forward exactly."""
    x = jnp.transpose(x1, (0, 3, 2, 1))                      # (N, T, V, C_in)
    x = jnp.einsum('ntuv,ntvc->ntuc', g, x)                  # g.matmul(x)
    x = jnp.transpose(x, (0, 3, 2, 1))                       # (N, C_in, V, T)
    out = (jnp.einsum('oc,ncvt->novt', w, x)
           + jnp.einsum('oc,ncvt->novt', w1, x1))            # 1x1 convs, no bias
    return out


if __name__ == "__main__":
    # Small shapes consistent with the module: batch=2, in=4, out=8, joints V=16, frames T=8.
    N, C_in, C_out, V, T = 2, 4, 8, 16, 8

    key = jax.random.PRNGKey(0)
    k_x, k_g, k_w, k_w1 = jax.random.split(key, 4)

    x1 = jax.random.normal(k_x, (N, C_in, V, T), dtype=jnp.float32)
    g = jax.nn.softmax(jax.random.normal(k_g, (N, T, V, V), dtype=jnp.float32), axis=-1)

    # Deterministic synthetic 1x1-conv weights (Conv2d weight (C_out, C_in, 1, 1) squeezed).
    w = jax.random.normal(k_w, (C_out, C_in), dtype=jnp.float32) * 0.1    # self.w  (bias=False)
    w1 = jax.random.normal(k_w1, (C_out, C_in), dtype=jnp.float32) * 0.1  # self.w1 (bias=False)

    fwd = jax.jit(gcn_spa_forward)
    out = jax.block_until_ready(fwd(x1, g, w, w1))

    ref = gcn_spa_reference(x1, g, w, w1)
    assert out.shape == (N, C_out, V, T)
    assert jnp.allclose(out, ref, atol=1e-4, rtol=1e-4), "mismatch vs reference"

    print("KERNEL_OK")
</pallas_src>

<mosaic_0001>
module attributes {stable_mosaic.version = 11 : i64} {
  func.func @gcn_spa_kernel(%arg0: i32, %arg1: memref<2x4x128xf32, #tpu.memory_space<vmem>>, %arg2: memref<2x128x128xf32, #tpu.memory_space<vmem>>, %arg3: memref<8x4xf32, #tpu.memory_space<vmem>>, %arg4: memref<8x4xf32, #tpu.memory_space<vmem>>, %arg5: memref<2x8x128xf32, #tpu.memory_space<vmem>>) attributes {dimension_semantics = [#tpu.dimension_semantics<parallel>], iteration_bounds = array<i64: 1>, scalar_prefetch = 0 : i64, scratch_operands = 0 : i64, tpu.core_type = #tpu.core_type<tc>, window_params = [{transform_indices = @transform_0, window_bounds = array<i64: 2, 4, 128>}, {transform_indices = @transform_1, window_bounds = array<i64: 2, 128, 128>}, {pipeline_mode = #tpu.pipeline_mode<synchronous>, transform_indices = @transform_2, window_bounds = array<i64: 8, 4>}, {pipeline_mode = #tpu.pipeline_mode<synchronous>, transform_indices = @transform_3, window_bounds = array<i64: 8, 4>}, {transform_indices = @transform_4, window_bounds = array<i64: 2, 8, 128>}]} {
    %c0 = arith.constant 0 : index
    %c0_0 = arith.constant 0 : index
    %0 = vector.load %arg3[%c0, %c0_0] : memref<8x4xf32, #tpu.memory_space<vmem>>, vector<8x4xf32>
    %c0_1 = arith.constant 0 : index
    %c0_2 = arith.constant 0 : index
    %1 = vector.load %arg4[%c0_1, %c0_2] : memref<8x4xf32, #tpu.memory_space<vmem>>, vector<8x4xf32>
    %c0_3 = arith.constant 0 : index
    %c0_4 = arith.constant 0 : index
    %c0_5 = arith.constant 0 : index
    %2 = vector.load %arg1[%c0_3, %c0_4, %c0_5] : memref<2x4x128xf32, #tpu.memory_space<vmem>>, vector<1x4x128xf32>
    %3 = vector.shape_cast %2 : vector<1x4x128xf32> to vector<4x128xf32>
    %c0_6 = arith.constant 0 : index
    %c0_7 = arith.constant 0 : index
    %c0_8 = arith.constant 0 : index
    %4 = vector.load %arg2[%c0_6, %c0_7, %c0_8] : memref<2x128x128xf32, #tpu.memory_space<vmem>>, vector<1x128x128xf32>
    %5 = vector.shape_cast %4 : vector<1x128x128xf32> to vector<128x128xf32>
    %cst = arith.constant dense<0.000000e+00> : vector<4x128xf32>
    %6 = tpu.matmul %3, %5, %cst {dimension_numbers = #tpu.dot_dimension_numbers<[1], [0], [0], [1], [0, 0, 1, 1], [], []>} : vector<4x128xf32>, vector<128x128xf32>, vector<4x128xf32> -> vector<4x128xf32>
    %cst_9 = arith.constant dense<0.000000e+00> : vector<8x128xf32>
    %7 = tpu.matmul %0, %6, %cst_9 {dimension_numbers = #tpu.dot_dimension_numbers<[1], [0], [0], [1], [0, 0, 1, 1], [], []>} : vector<8x4xf32>, vector<4x128xf32>, vector<8x128xf32> -> vector<8x128xf32>
    %cst_10 = arith.constant dense<0.000000e+00> : vector<8x128xf32>
    %8 = tpu.matmul %1, %3, %cst_10 {dimension_numbers = #tpu.dot_dimension_numbers<[1], [0], [0], [1], [0, 0, 1, 1], [], []>} : vector<8x4xf32>, vector<4x128xf32>, vector<8x128xf32> -> vector<8x128xf32>
    %9 = arith.addf %7, %8 : vector<8x128xf32>
    %c0_11 = arith.constant 0 : index
    %c0_12 = arith.constant 0 : index
    %c0_13 = arith.constant 0 : index
    %10 = vector.load %arg5[%c0_11, %c0_12, %c0_13] : memref<2x8x128xf32, #tpu.memory_space<vmem>>, vector<1x8x128xf32>
    %11 = vector.shape_cast %10 : vector<1x8x128xf32> to vector<8x128xf32>
    %12 = vector.shape_cast %9 : vector<8x128xf32> to vector<1x8x128xf32>
    tpu.vector_store %arg5[%c0_11, %c0_12, %c0_13], %12 {strides = array<i32>} : memref<2x8x128xf32, #tpu.memory_space<vmem>>, vector<1x8x128xf32>,
    %c1 = arith.constant 1 : index
    %c0_14 = arith.constant 0 : index
    %c0_15 = arith.constant 0 : index
    %13 = vector.load %arg1[%c1, %c0_14, %c0_15] : memref<2x4x128xf32, #tpu.memory_space<vmem>>, vector<1x4x128xf32>
    %14 = vector.shape_cast %13 : vector<1x4x128xf32> to vector<4x128xf32>
    %c1_16 = arith.constant 1 : index
    %c0_17 = arith.constant 0 : index
    %c0_18 = arith.constant 0 : index
    %15 = vector.load %arg2[%c1_16, %c0_17, %c0_18] : memref<2x128x128xf32, #tpu.memory_space<vmem>>, vector<1x128x128xf32>
    %16 = vector.shape_cast %15 : vector<1x128x128xf32> to vector<128x128xf32>
    %cst_19 = arith.constant dense<0.000000e+00> : vector<4x128xf32>
    %17 = tpu.matmul %14, %16, %cst_19 {dimension_numbers = #tpu.dot_dimension_numbers<[1], [0], [0], [1], [0, 0, 1, 1], [], []>} : vector<4x128xf32>, vector<128x128xf32>, vector<4x128xf32> -> vector<4x128xf32>
    %cst_20 = arith.constant dense<0.000000e+00> : vector<8x128xf32>
    %18 = tpu.matmul %0, %17, %cst_20 {dimension_numbers = #tpu.dot_dimension_numbers<[1], [0], [0], [1], [0, 0, 1, 1], [], []>} : vector<8x4xf32>, vector<4x128xf32>, vector<8x128xf32> -> vector<8x128xf32>
    %cst_21 = arith.constant dense<0.000000e+00> : vector<8x128xf32>
    %19 = tpu.matmul %1, %14, %cst_21 {dimension_numbers = #tpu.dot_dimension_numbers<[1], [0], [0], [1], [0, 0, 1, 1], [], []>} : vector<8x4xf32>, vector<4x128xf32>, vector<8x128xf32> -> vector<8x128xf32>
    %20 = arith.addf %18, %19 : vector<8x128xf32>
    %c1_22 = arith.constant 1 : index
    %c0_23 = arith.constant 0 : index
    %c0_24 = arith.constant 0 : index
    %21 = vector.load %arg5[%c1_22, %c0_23, %c0_24] : memref<2x8x128xf32, #tpu.memory_space<vmem>>, vector<1x8x128xf32>
    %22 = vector.shape_cast %21 : vector<1x8x128xf32> to vector<8x128xf32>
    %23 = vector.shape_cast %20 : vector<8x128xf32> to vector<1x8x128xf32>
    tpu.vector_store %arg5[%c1_22, %c0_23, %c0_24], %23 {strides = array<i32>} : memref<2x8x128xf32, #tpu.memory_space<vmem>>, vector<1x8x128xf32>,
    return
  }
  func.func @transform_0(%arg0: i32) -> (i32, i32, i32) {
    %c0_i32 = arith.constant 0 : i32
    %c0_i32_0 = arith.constant 0 : i32
    %c0_i32_1 = arith.constant 0 : i32
    return %arg0, %c0_i32, %c0_i32_0 : i32, i32, i32
  }
  func.func @transform_1(%arg0: i32) -> (i32, i32, i32) {
    %c0_i32 = arith.constant 0 : i32
    %c0_i32_0 = arith.constant 0 : i32
    %c0_i32_1 = arith.constant 0 : i32
    return %arg0, %c0_i32, %c0_i32_0 : i32, i32, i32
  }
  func.func @transform_2(%arg0: i32) -> (i32, i32) {
    %c0_i32 = arith.constant 0 : i32
    %c0_i32_0 = arith.constant 0 : i32
    %c0_i32_1 = arith.constant 0 : i32
    return %c0_i32, %c0_i32_0 : i32, i32
  }
  func.func @transform_3(%arg0: i32) -> (i32, i32) {
    %c0_i32 = arith.constant 0 : i32
    %c0_i32_0 = arith.constant 0 : i32
    %c0_i32_1 = arith.constant 0 : i32
    return %c0_i32, %c0_i32_0 : i32, i32
  }
  func.func @transform_4(%arg0: i32) -> (i32, i32, i32) {
    %c0_i32 = arith.constant 0 : i32
    %c0_i32_0 = arith.constant 0 : i32
    %c0_i32_1 = arith.constant 0 : i32
    return %arg0, %c0_i32, %c0_i32_0 : i32, i32, i32
  }
}

</mosaic_0001>

<bundles_post_ra>
// kernel: gcn_spa_forward.1
= control target key start
LH: loop header
LB: loop body
LE: loop exit
PB: predicated region body
PF: predicated region fallthrough
CT: control target
= control target key end

     0   :  { %vm60_vm0 = vcmask 1043456   ;;  %vm56_vm1 = vcmask 31744   ;;  %s367_s1 = inlined_call_operand.vmem [shape: f32[2,128,128], index: 1, kind: input, shape index: {}]   ;;  %s368_s0 = inlined_call_operand.vmem [shape: f32[2,4,128], index: 0, kind: input, shape index: {}]   ;;  %s369_s3 = inlined_call_operand.vmem [shape: f32[8,4], index: 3, kind: input, shape index: {}]   ;;  %s370_s2 = inlined_call_operand.vmem [shape: f32[8,4], index: 2, kind: input, shape index: {}]   ;;  %s371_s4 = inlined_call_operand.vmem [shape: f32[2,8,128], index: 4, kind: output, shape index: {}]  }
   0x1   :  { %v222_v0 = vld [vmem:[%s367_s1 + $0xf8] sm:$0xff]  ;;  %v221_v1 = vld [vmem:[%s367_s1 + $0xf0] sm:$0xff]  ;;  %v220_v4 = vld [vmem:[%s367_s1 + $0xe8] sm:$0xff] }
   0x2   :  { %130 = vmatpush.msra.mxu3 %v222_v0  ;;  %v35_v2 = vld [vmem:[%s367_s1 + $0x78] sm:$0xff]  ;;  %v34_v3 = vld [vmem:[%s367_s1 + $0x70] sm:$0xff]  ;;  %v33_v5 = vld [vmem:[%s367_s1 + $0x68] sm:$0xff] }
   0x3   :  { %36 = vmatpush.msra.mxu0 %v35_v2  ;;  %v219_v6 = vld [vmem:[%s367_s1 + $0xe0] sm:$0xff]  ;;  %v218_v8 = vld [vmem:[%s367_s1 + $0xd8] sm:$0xff]  ;;  %v217_v10 = vld [vmem:[%s367_s1 + $0xd0] sm:$0xff] }
   0x4   :  { %131 = vmatpush.msra.mxu3 %v221_v1  ;;  %v32_v7 = vld [vmem:[%s367_s1 + $0x60] sm:$0xff]  ;;  %v31_v9 = vld [vmem:[%s367_s1 + $0x58] sm:$0xff]  ;;  %v30_v11 = vld [vmem:[%s367_s1 + $0x50] sm:$0xff] }
   0x5   :  { %37 = vmatpush.msra.mxu0 %v34_v3  ;;  %v216_v12 = vld [vmem:[%s367_s1 + $0xc8] sm:$0xff]  ;;  %v215_v14 = vld [vmem:[%s367_s1 + $0xc0] sm:$0xff]  ;;  %v214_v16 = vld [vmem:[%s367_s1 + $0xb8] sm:$0xff] }
   0x6   :  { %132 = vmatpush.msra.mxu3 %v220_v4  ;;  %v29_v13 = vld [vmem:[%s367_s1 + $0x48] sm:$0xff]  ;;  %v28_v15 = vld [vmem:[%s367_s1 + $0x40] sm:$0xff]  ;;  %v27_v17 = vld [vmem:[%s367_s1 + $0x38] sm:$0xff] }
   0x7   :  { %38 = vmatpush.msra.mxu0 %v33_v5  ;;  %v213_v18 = vld [vmem:[%s367_s1 + $0xb0] sm:$0xff]  ;;  %v212_v20 = vld [vmem:[%s367_s1 + $0xa8] sm:$0xff]  ;;  %v211_v22 = vld [vmem:[%s367_s1 + $0xa0] sm:$0xff] }
   0x8   :  { %133 = vmatpush.msra.mxu3 %v219_v6  ;;  %v26_v19 = vld [vmem:[%s367_s1 + $0x30] sm:$0xff]  ;;  %v25_v21 = vld [vmem:[%s367_s1 + $0x28] sm:$0xff]  ;;  %v24_v23 = vld [vmem:[%s367_s1 + $0x20] sm:$0xff] }
   0x9   :  { %39 = vmatpush.msra.mxu0 %v32_v7  ;;  %v210_v24 = vld [vmem:[%s367_s1 + $0x98] sm:$0xff]  ;;  %v209_v26 = vld [vmem:[%s367_s1 + $0x90] sm:$0xff]  ;;  %v208_v28 = vld [vmem:[%s367_s1 + $0x88] sm:$0xff] }
   0xa   :  { %134 = vmatpush.msra.mxu3 %v218_v8  ;;  %v23_v25 = vld [vmem:[%s367_s1 + $0x18] sm:$0xff]  ;;  %v22_v27 = vld [vmem:[%s367_s1 + $0x10] sm:$0xff]  ;;  %v21_v29 = vld [vmem:[%s367_s1 + $0x8] sm:$0xff] }
   0xb   :  { %40 = vmatpush.msra.mxu0 %v31_v9  ;;  %v207_v30 = vld [vmem:[%s367_s1 + $0x80] sm:$0xff] }
   0xc   :  { %135 = vmatpush.msra.mxu3 %v217_v10  ;;  %v206_v31 = vld [vmem:[%s368_s0 + $0x4] sm:$0xf]  ;;  %v19_v33 = vld [vmem:[%s368_s0] sm:$0xf] }
   0xd   :  { %41 = vmatpush.msra.mxu0 %v30_v11  ;;  %v20_v32 = vld [vmem:[%s367_s1] sm:$0xff]  ;;  %202 = vmatpush.msk.msra.mxu1 %vm60_vm0, %v19_v33 }
   0xe   :  { %136 = vmatpush.msra.mxu3 %v216_v12  ;;  %v18_v34 = vld [vmem:[%s369_s3] sm:$0xff] }
   0xf   :  { %42 = vmatpush.msra.mxu0 %v29_v13  ;;  %223 = vmatpush.msk.msrb.mxu1 %vm60_vm0, %v206_v31  ;;  %v17_v35 = vld [vmem:[%s370_s2] sm:$0xff] }
  0x10   :  { %137 = vmatpush.msra.mxu3 %v215_v14  ;;  %203 = vmatmul.msk.f32.vlgmr.msra.gmra.mxu1 %vm56_vm1, %v18_v34 }
  0x11   :  { %43 = vmatpush.msra.mxu0 %v28_v15 }
  0x12   :  { %138 = vmatpush.msra.mxu3 %v214_v16 }
  0x13   :  { %44 = vmatpush.msra.mxu0 %v27_v17 }
  0x14   :  { %139 = vmatpush.msra.mxu3 %v213_v18 }
  0x15   :  { %45 = vmatpush.msra.mxu0 %v26_v19 }
  0x16   :  { %140 = vmatpush.msra.mxu3 %v212_v20 }
  0x17   :  { %46 = vmatpush.msra.mxu0 %v25_v21 }
  0x18   :  { %141 = vmatpush.msra.mxu3 %v211_v22  ;;  %224 = vmatmul.msk.f32.vlgmr.msrb.gmra.mxu1 %vm56_vm1, %v18_v34 }
  0x19   :  { %47 = vmatpush.msra.mxu0 %v24_v23 }
  0x1a   :  { %142 = vmatpush.msra.mxu3 %v210_v24 }
  0x1b   :  { %48 = vmatpush.msra.mxu0 %v23_v25 }
  0x1c   :  { %143 = vmatpush.msra.mxu3 %v209_v26 }
  0x1d   :  { %49 = vmatpush.msra.mxu0 %v22_v27 }
  0x1e   :  { %144 = vmatpush.msra.mxu3 %v208_v28 }
  0x1f   :  { %50 = vmatpush.msra.mxu0 %v21_v29 }
  0x20   :  { %145 = vmatpush.msra.mxu3 %v207_v30 }
  0x21   :  { %146 = vmatmul.f32.vlgmr.msra.gmra.mxu3 %v206_v31  ;;  %51 = vmatpush.msra.mxu0 %v20_v32 }
  0x22   :  { %52 = vmatmul.f32.vlgmr.msra.gmra.mxu0 %v19_v33 }
  0x8d   :  { %v81_v38 = vpop.f32.mrf.mxu1 }
  0x95   :  { %v170_v41 = vpop.f32.mrf.mxu1 }
  0x9f   :  { %v53_v36 = vpop.f32.mrf.mxu0 }
  0xa0   :  { %204 = vmatpush.msk.msra.mxu2 %vm60_vm0, %v53_v36 }
  0xa1   :  { %205 = vmatmul.msk.f32.vlgmr.msra.gmra.mxu2 %vm56_vm1, %v17_v35 }
  0xa4   :  { %v147_v37 = vpop.f32.mrf.mxu3 }
  0xa5   :  { %225 = vmatpush.msk.msrb.mxu2 %vm60_vm0, %v147_v37 }
  0xa9   :  { %226 = vmatmul.msk.f32.vlgmr.msrb.gmra.mxu2 %vm56_vm1, %v17_v35 }
 0x124   :  { %v107_v39 = vpop.f32.mrf.mxu2 }
 0x125   :  { %v108_v40 = vadd.f32 %v107_v39, %v81_v38 }
 0x127   :  { %110 = vst [vmem:[%s371_s4] sm:$0xff] %v108_v40 }
 0x12c   :  { %v193_v42 = vpop.f32.mrf.mxu2 }
 0x12d   :  { %v194_v43 = vadd.f32 %v193_v42, %v170_v41 }
 0x12f   :  { %227 = vst [vmem:[%s371_s4 + $0x8] sm:$0xff] %v194_v43 }

</bundles_post_ra>
